<compile_context>
chip_gen: v6e
topology: v6e:2x2x1
jax: 0.10.0
libtpu: 0.0.40
codegen_flags: <defaults>
</compile_context>

<pallas_src>
import functools

import jax
import jax.numpy as jnp
from jax.experimental import pallas as pl
from jax.experimental.pallas import tpu as pltpu


def _round_up(x, m):
    return ((x + m - 1) // m) * m


# ----------------------------------------------------------------------------
# Tiled FC kernel:  y = x @ W^T + b  (optional ReLU), accumulator pattern.
# ----------------------------------------------------------------------------
def _fc_kernel(x_ref, wt_ref, b_ref, o_ref, acc_ref, *, activate: bool):
    k = pl.program_id(2)

    @pl.when(k == 0)
    def _():
        acc_ref[...] = jnp.zeros_like(acc_ref)

    # wt is already (K, M): MXU consumes it in native orientation, no transpose.
    acc_ref[...] += jnp.dot(
        x_ref[...], wt_ref[...], preferred_element_type=jnp.float32
    )

    @pl.when(k == pl.num_programs(2) - 1)
    def _():
        y = acc_ref[...] + b_ref[...]  # bias added exactly once, in the epilogue
        if activate:
            y = jnp.maximum(y, 0.0)
        o_ref[...] = y.astype(o_ref.dtype)


def fc_forward(x, weight, bias, *, activate: bool = True,
               tm_max: int = 128, tn_max: int = 256, tk_max: int = 512,
               compute_dtype=jnp.bfloat16):
    """Equivalent of nn.Linear(+ReLU): ReLU(x @ weight.T + bias).

    x: (N, K); weight: (M, K) (PyTorch convention); bias: (M,).
    Matmul runs with `compute_dtype` operands and f32 accumulation; the result
    is returned in x.dtype with shape (N, M).
    """
    n, k = x.shape
    m, k2 = weight.shape
    assert k == k2, "in_features mismatch"
    out_dtype = x.dtype

    # Tile sizes (multiples of (8, 128)); pad all dims to the tile grid.
    tm = tm_max if n >= tm_max else _round_up(n, 8)
    tn = min(tn_max, _round_up(m, 128))
    tk = min(tk_max, _round_up(k, 128))
    n_pad = _round_up(n, tm)
    m_pad = _round_up(m, tn)
    k_pad = _round_up(k, tk)

    # Wrapper-side layout plumbing (outside the hot loop):
    #   pre-transpose the weight to (K, M), zero-pad, cast operands to bf16.
    xp = jnp.pad(x, ((0, n_pad - n), (0, k_pad - k))).astype(compute_dtype)
    wt = jnp.pad(weight.T, ((0, k_pad - k), (0, m_pad - m))).astype(compute_dtype)
    bp = jnp.pad(bias.reshape(1, m).astype(jnp.float32), ((0, 0), (0, m_pad - m)))

    grid = (n_pad // tm, m_pad // tn, k_pad // tk)

    flops = 2 * n_pad * m_pad * k_pad
    bytes_accessed = (
        xp.size * xp.dtype.itemsize
        + wt.size * wt.dtype.itemsize
        + bp.size * 4
        + n_pad * m_pad * jnp.dtype(out_dtype).itemsize
    )

    kernel = functools.partial(_fc_kernel, activate=activate)

    out = pl.pallas_call(
        kernel,
        out_shape=jax.ShapeDtypeStruct((n_pad, m_pad), out_dtype),
        grid_spec=pltpu.PrefetchScalarGridSpec(
            num_scalar_prefetch=0,
            grid=grid,
            in_specs=[
                pl.BlockSpec((tm, tk), lambda i, j, kk: (i, kk)),   # x tile
                pl.BlockSpec((tk, tn), lambda i, j, kk: (kk, j)),   # W^T tile
                pl.BlockSpec((1, tn), lambda i, j, kk: (0, j)),     # bias tile
            ],
            out_specs=pl.BlockSpec((tm, tn), lambda i, j, kk: (i, j)),
            scratch_shapes=[pltpu.VMEM((tm, tn), jnp.float32)],
        ),
        compiler_params=pltpu.CompilerParams(
            dimension_semantics=("parallel", "parallel", "arbitrary"),
        ),
        cost_estimate=pl.CostEstimate(
            flops=flops, transcendentals=0, bytes_accessed=bytes_accessed
        ),
    )(xp, wt, bp)

    return out[:n, :m]


# ----------------------------------------------------------------------------
# WSDDN head fusion: softmax(scores, dim=0) * softmax(det, dim=1)
# ----------------------------------------------------------------------------
def _wsddn_head_kernel(s_ref, d_ref, o_ref):
    s = s_ref[...].astype(jnp.float32)
    d = d_ref[...].astype(jnp.float32)
    # class score: softmax over ROIs (axis 0)
    es = jnp.exp(s - jnp.max(s, axis=0, keepdims=True))
    cls = es / jnp.sum(es, axis=0, keepdims=True)
    # detection score: softmax over classes (axis 1)
    ed = jnp.exp(d - jnp.max(d, axis=1, keepdims=True))
    det = ed / jnp.sum(ed, axis=1, keepdims=True)
    o_ref[...] = (cls * det).astype(o_ref.dtype)


def wsddn_box_prob(score_logits, det_logits):
    n, c = score_logits.shape
    return pl.pallas_call(
        _wsddn_head_kernel,
        out_shape=jax.ShapeDtypeStruct((n, c), score_logits.dtype),
        grid_spec=pltpu.PrefetchScalarGridSpec(
            num_scalar_prefetch=0,
            grid=(1,),
            in_specs=[
                pl.BlockSpec((n, c), lambda i: (0, 0)),
                pl.BlockSpec((n, c), lambda i: (0, 0)),
            ],
            out_specs=pl.BlockSpec((n, c), lambda i: (0, 0)),
        ),
        compiler_params=pltpu.CompilerParams(dimension_semantics=("arbitrary",)),
    )(score_logits, det_logits)


# ----------------------------------------------------------------------------
# WSDDN head forward (classifier + score_out + bbox_out + softmaxes + product)
# ----------------------------------------------------------------------------
def wsddn_head_forward(rois_pooled_flat, params):
    # classifier: Linear -> ReLU -> Dropout(identity at inference) -> Linear -> ReLU
    h = fc_forward(rois_pooled_flat, params["fc6_w"], params["fc6_b"], activate=True)
    h = fc_forward(h, params["fc7_w"], params["fc7_b"], activate=True)
    score_logits = fc_forward(h, params["score_w"], params["score_b"], activate=False)
    det_logits = fc_forward(h, params["bbox_w"], params["bbox_b"], activate=False)
    return wsddn_box_prob(score_logits, det_logits)


def init_fc_params(key, in_features, out_features, dtype=jnp.float32):
    """nn.Linear default init (uniform +/- 1/sqrt(in_features))."""
    kw, kb = jax.random.split(key)
    bound = 1.0 / float(in_features) ** 0.5
    weight = jax.random.uniform(
        kw, (out_features, in_features), dtype=dtype, minval=-bound, maxval=bound
    )
    bias = jax.random.uniform(
        kb, (out_features,), dtype=dtype, minval=-bound, maxval=bound
    )
    return weight, bias


# ----------------------------------------------------------------------------
# Pure-JAX reference (same bf16-operand / f32-accumulate contract)
# ----------------------------------------------------------------------------
def _fc_ref(x, w, b, activate, compute_dtype=jnp.bfloat16):
    y = jnp.dot(
        x.astype(compute_dtype), w.astype(compute_dtype).T,
        preferred_element_type=jnp.float32,
    ) + b.astype(jnp.float32)
    if activate:
        y = jnp.maximum(y, 0.0)
    return y.astype(x.dtype)


def wsddn_head_reference(x, params):
    h = _fc_ref(x, params["fc6_w"], params["fc6_b"], True)
    h = _fc_ref(h, params["fc7_w"], params["fc7_b"], True)
    s = _fc_ref(h, params["score_w"], params["score_b"], False)
    d = _fc_ref(h, params["bbox_w"], params["bbox_b"], False)
    cls = jax.nn.softmax(s, axis=0)
    det = jax.nn.softmax(d, axis=1)
    return cls * det


if __name__ == "__main__":
    key = jax.random.PRNGKey(0)
    k_x, k6, k7, ks, kb = jax.random.split(key, 5)

    # Small shapes consistent with the module:
    #   8 ROIs, 6x6 pooled spatial x 32 channels (scaled-down 9216),
    #   hidden 512 (scaled-down 4096), 20 VOC classes.
    n_roi, feat_dim, hidden, n_cls = 8, 6 * 6 * 32, 512, 20

    rois_pooled_flat = jax.random.normal(k_x, (n_roi, feat_dim), dtype=jnp.float32)

    params = {}
    params["fc6_w"], params["fc6_b"] = init_fc_params(k6, feat_dim, hidden)
    params["fc7_w"], params["fc7_b"] = init_fc_params(k7, hidden, hidden)
    params["score_w"], params["score_b"] = init_fc_params(ks, hidden, n_cls)
    params["bbox_w"], params["bbox_b"] = init_fc_params(kb, hidden, n_cls)

    # Run the Pallas WSDDN head.
    box_prob = wsddn_head_forward(rois_pooled_flat, params)
    box_prob = jax.block_until_ready(box_prob)

    # Tight single-layer check (exercises multi-step K accumulation: K=1152 > tk).
    y = fc_forward(rois_pooled_flat, params["fc6_w"], params["fc6_b"], activate=True)
    y_ref = _fc_ref(rois_pooled_flat, params["fc6_w"], params["fc6_b"], True)
    assert y.shape == (n_roi, hidden)
    assert jnp.allclose(y, y_ref, atol=1e-3, rtol=1e-3)

    # End-to-end head check.
    ref = wsddn_head_reference(rois_pooled_flat, params)
    assert box_prob.shape == (n_roi, n_cls)
    assert bool(jnp.all(jnp.isfinite(box_prob)))
    assert jnp.allclose(box_prob, ref, atol=5e-3, rtol=5e-2)

    print("KERNEL_OK")
</pallas_src>

<mosaic_0001>
module attributes {stable_mosaic.version = 11 : i64} {
  func.func @_fc_kernel(%arg0: i32, %arg1: i32, %arg2: i32, %arg3: memref<8x512xbf16, #tpu.memory_space<vmem>>, %arg4: memref<512x256xbf16, #tpu.memory_space<vmem>>, %arg5: memref<1x256xf32, #tpu.memory_space<vmem>>, %arg6: memref<8x256xf32, #tpu.memory_space<vmem>>, %arg7: memref<8x256xf32, #tpu.memory_space<vmem>>) attributes {dimension_semantics = [#tpu.dimension_semantics<parallel>, #tpu.dimension_semantics<parallel>, #tpu.dimension_semantics<arbitrary>], iteration_bounds = array<i64: 1, 2, 3>, scalar_prefetch = 0 : i64, scratch_operands = 1 : i64, tpu.core_type = #tpu.core_type<tc>, window_params = [{transform_indices = @transform_0, window_bounds = array<i64: 8, 512>}, {transform_indices = @transform_1, window_bounds = array<i64: 512, 256>}, {transform_indices = @transform_2, window_bounds = array<i64: 1, 256>}, {transform_indices = @transform_3, window_bounds = array<i64: 8, 256>}]} {
    %c0_i32 = arith.constant 0 : i32
    %0 = arith.cmpi eq, %arg2, %c0_i32 : i32
    %1 = arith.extui %0 : i1 to i32
    %c0_i32_0 = arith.constant 0 : i32
    %2 = arith.cmpi ne, %1, %c0_i32_0 : i32
    scf.if %2 {
      %cst_9 = arith.constant 0.000000e+00 : f32
      %12 = vector.broadcast %cst_9 : f32 to vector<8x256xf32>
      %c0_10 = arith.constant 0 : index
      %c0_11 = arith.constant 0 : index
      %13 = vector.load %arg7[%c0_10, %c0_11] : memref<8x256xf32, #tpu.memory_space<vmem>>, vector<8x256xf32>
      tpu.vector_store %arg7[%c0_10, %c0_11], %12 {strides = array<i32>} : memref<8x256xf32, #tpu.memory_space<vmem>>, vector<8x256xf32>,
    } else {
    }
    %c0 = arith.constant 0 : index
    %c0_1 = arith.constant 0 : index
    %3 = vector.load %arg7[%c0, %c0_1] : memref<8x256xf32, #tpu.memory_space<vmem>>, vector<8x256xf32>
    %c0_2 = arith.constant 0 : index
    %c0_3 = arith.constant 0 : index
    %4 = vector.load %arg3[%c0_2, %c0_3] : memref<8x512xbf16, #tpu.memory_space<vmem>>, vector<8x512xbf16>
    %c0_4 = arith.constant 0 : index
    %c0_5 = arith.constant 0 : index
    %5 = vector.load %arg4[%c0_4, %c0_5] : memref<512x256xbf16, #tpu.memory_space<vmem>>, vector<512x256xbf16>
    %cst = arith.constant dense<0.000000e+00> : vector<8x256xf32>
    %6 = tpu.matmul %4, %5, %cst {dimension_numbers = #tpu.dot_dimension_numbers<[1], [0], [0], [1], [0, 0, 1, 1], [], []>} : vector<8x512xbf16>, vector<512x256xbf16>, vector<8x256xf32> -> vector<8x256xf32>
    %7 = arith.addf %3, %6 : vector<8x256xf32>
    %c0_6 = arith.constant 0 : index
    %c0_7 = arith.constant 0 : index
    %8 = vector.load %arg7[%c0_6, %c0_7] : memref<8x256xf32, #tpu.memory_space<vmem>>, vector<8x256xf32>
    tpu.vector_store %arg7[%c0_6, %c0_7], %7 {strides = array<i32>} : memref<8x256xf32, #tpu.memory_space<vmem>>, vector<8x256xf32>,
    %c2_i32 = arith.constant 2 : i32
    %9 = arith.cmpi eq, %arg2, %c2_i32 : i32
    %10 = arith.extui %9 : i1 to i32
    %c0_i32_8 = arith.constant 0 : i32
    %11 = arith.cmpi ne, %10, %c0_i32_8 : i32
    scf.if %11 {
      %c0_9 = arith.constant 0 : index
      %c0_10 = arith.constant 0 : index
      %12 = vector.load %arg7[%c0_9, %c0_10] : memref<8x256xf32, #tpu.memory_space<vmem>>, vector<8x256xf32>
      %c0_11 = arith.constant 0 : index
      %c0_12 = arith.constant 0 : index
      %13 = vector.load %arg5[%c0_11, %c0_12] : memref<1x256xf32, #tpu.memory_space<vmem>>, vector<1x256xf32>
      %14 = vector.broadcast %13 : vector<1x256xf32> to vector<8x256xf32>
      %15 = arith.addf %12, %14 : vector<8x256xf32>
      %cst_13 = arith.constant 0.000000e+00 : f32
      %16 = vector.broadcast %cst_13 : f32 to vector<8x256xf32>
      %17 = arith.maximumf %15, %16 : vector<8x256xf32>
      %c0_14 = arith.constant 0 : index
      %c0_15 = arith.constant 0 : index
      %18 = vector.load %arg6[%c0_14, %c0_15] : memref<8x256xf32, #tpu.memory_space<vmem>>, vector<8x256xf32>
      tpu.vector_store %arg6[%c0_14, %c0_15], %17 {strides = array<i32>} : memref<8x256xf32, #tpu.memory_space<vmem>>, vector<8x256xf32>,
    } else {
    }
    return
  }
  func.func @transform_0(%arg0: i32, %arg1: i32, %arg2: i32) -> (i32, i32) {
    %c0_i32 = arith.constant 0 : i32
    return %arg0, %arg2 : i32, i32
  }
  func.func @transform_1(%arg0: i32, %arg1: i32, %arg2: i32) -> (i32, i32) {
    %c0_i32 = arith.constant 0 : i32
    return %arg2, %arg1 : i32, i32
  }
  func.func @transform_2(%arg0: i32, %arg1: i32, %arg2: i32) -> (i32, i32) {
    %c0_i32 = arith.constant 0 : i32
    %c0_i32_0 = arith.constant 0 : i32
    return %c0_i32, %arg1 : i32, i32
  }
  func.func @transform_3(%arg0: i32, %arg1: i32, %arg2: i32) -> (i32, i32) {
    %c0_i32 = arith.constant 0 : i32
    return %arg0, %arg1 : i32, i32
  }
}

</mosaic_0001>

<bundles_post_ra>
// kernel: tpu_custom_call.1
= control target key start
LH: loop header
LB: loop body
LE: loop exit
PB: predicated region body
PF: predicated region fallthrough
CT: control target
= control target key end

     0   :  { %s1969_s0 = inlined_call_operand.hbm [shape: bf16[8,1536], index: 0, kind: input, shape index: {}]   ;;  %s1970_s1 = inlined_call_operand.hbm [shape: bf16[1536,512], index: 1, kind: input, shape index: {}]   ;;  %s1971_s2 = inlined_call_operand.hbm [shape: f32[1,512], index: 2, kind: input, shape index: {}]   ;;  %s1972_s3 = inlined_call_operand.hbm [shape: f32[8,512], index: 3, kind: output, shape index: {}]  }
   0x1   :  { %1978 = sst [smem:[#allocation20_spill]] %s1969_s0 }
   0x2   :  { %1979 = sst [smem:[#allocation21_spill]] %s1970_s1 }
   0x3   :  { %1980 = sst [smem:[#allocation22_spill]] %s1971_s2 }
   0x4   :  { %1981 = sst [smem:[#allocation23_spill]] %s1972_s3 }
   0x5   :  { %8 = vsyncpa [#allocation4], 0 }
   0x6   :  { %10 = vsyncpa [#allocation4 + $0x1], 0 }
   0x7   :  { %11 = vsyncpa [#allocation7], 0 }
   0x8   :  { %13 = vsyncpa [#allocation7 + $0x1], 0 }
   0x9   :  { %14 = vsyncpa [#allocation5], 0 }
   0xa   :  { %16 = vsyncpa [#allocation5 + $0x1], 0  ;;  %s1573_s12 = smov 0   ;;  %s1575_s13 = smov 0  }
   0xb   :  { %s1577_s14 = smov 0   ;;  %s1579_s15 = smov 0  }
   0xc   :  { %s1581_s16 = smov 0   ;;  %s1583_s17 = smov 0  }
   0xd   :  { %s1585_s18 = smov 0   ;;  %s1587_s19 = smov 0  }
   0xe   :  { %s1589_s20 = smov 0   ;;  %s1591_s21 = smov 0  }
   0xf   :  { %s1593_s22 = smov 0   ;;  %s1595_s23 = smov 0  }
  0x10   :  { %s1597_s24 = smov 0   ;;  %s1599_s25 = smov 0  }
  0x11 LB: > { %1982 = sst [smem:[#allocation14_spill]] %s1491_s12  ;;  %s34_s26 = sadd.s32 1, %s1535_s23  ;;  %s1543_s25 = sphi %s1599_s25, %s22_s25   ;;  %s1539_s24 = sphi %s1597_s24, %s2026_s24   ;;  %s1535_s23 = sphi %s1595_s23, %s2025_s23   ;;  %s1531_s22 = sphi %s1593_s22, %s2024_s22   ;;  %s1527_s21 = sphi %s1591_s21, %s2023_s21   ;;  %s1523_s20 = sphi %s1589_s20, %s2022_s20   ;;  %s1519_s19 = sphi %s1587_s19, %s2021_s19   ;;  %s1515_s18 = sphi %s1585_s18, %s2020_s18   ;;  %s1511_s17 = sphi %s1583_s17, %s2019_s17   ;;  %s1507_s16 = sphi %s1581_s16, %s2018_s16   ;;  %s1503_s15 = sphi %s1579_s15, %s2017_s15   ;;  %s1499_s14 = sphi %s1577_s14, %s2016_s14   ;;  %s1495_s13 = sphi %s1575_s13, %s2015_s13   ;;  %s1491_s12 = sphi %s1573_s12, %s2012_s12  }
  0x12   : > { %1983 = sst [smem:[#allocation15_spill]] %s1495_s13  ;;  %s37_s27 = sadd.s32 1, %s1539_s24 }
  0x13   : > { %1984 = sst [smem:[#allocation16_spill]] %s1527_s21  ;;  %p35_p0 = scmp.ge.s32.totalorder %s34_s26, 3 }
  0x14   : > { %1985 = sst [smem:[#allocation17_spill]] %s1531_s22  ;;  %p58_p1 = scmp.eq.s32.totalorder %s1543_s25, 0 }
  0x15   : > { %s78_s28 = sadd.s32 1, %s1511_s17  ;;  %p85_p2 = scmp.ne.s32.totalorder %s1511_s17, %s1507_s16 }
  0x16   : > { %s2028_s26 = smov (%p35_p0, %s34_s26), 0  ;;  %s2030_s27 = smov (!%p35_p0, %s37_s27), %s1539_s24 }
  0x17   : > { %1986 = sst [smem:[#allocation18_spill]] %s2028_s26  ;;  %s1654_s29 = ssub.s32 %s1535_s23, %s2028_s26 }
  0x18   : > { %p1658_p3 = por %p85_p2, %p58_p1  ;;  %p39_p4 = scmp.ge.s32.totalorder %s2030_s27, 2 }
  0x19   : > { %p91_p5 = scmp.ne.s32.totalorder %s1507_s16, %s1503_s15  ;;  %p1977_p6 = scmp.lt.s32.totalorder %s1543_s25, 6 }
  0x1a   : > { %s2032_s27 = smov (%p39_p4, %s2030_s27), 0  ;;  %s1063_s4 = sshll.u32 %s1535_s23, 8 }
  0x1b   : > { %1988 = sst [smem:[#allocation19_spill]] %s2032_s27  ;;  %s190_s5 = sand.u32 1, %s1543_s25  }
  0x1c   : > { %s1671_s6 = ssub.s32 %s1539_s24, %s2032_s27  ;;  %s192_s8 = sand.u32 1, %s1511_s17  }
  0x1d   : > { %s75_s7 = sor.u32 %s1671_s6, %s1654_s29  ;;  %s975_s9 = sshll.u32 %s192_s8, 9 }
  0x1e   : > { %p76_p7 = scmp.eq.s32.totalorder %s75_s7, 0  ;;  %s977_s10 = sshll.u32 %s1539_s24, 1 }
  0x1f   : > { %s201_s26 = sadd.s32 %s1063_s4, %s977_s10  ;;  %s194_s3 = scalar_lea.vmem [#allocation6], %s975_s9 }
  0x20   : > { %s1678_s11 = scalar_select %p76_p7, %s1511_s17, %s78_s28  }
  0x21   : > { %s204_s22 = sshll.u32 %s194_s3, 4  ;;  %s979_s21 = sshll.u32 %s201_s26, 6  ;;  %s205_s22 = int_to_ptr.vmem [resolvable:$true] %s204_s22 }
  0x22   : > { %s1989_s1 = sld [smem:[#allocation21_spill]]  ;;  %p1689_p8 = pnand %p1977_p6, %p1658_p3 }
  0x23   : > { %s1693_s7 = scalar_lea.sflag [#allocation7], %s190_s5  ;;  %s1320_s28 = scalar_lea.vmem %s205_s22, 8192 }
  0x24   : > { %p1309_p9 = pneg %p1689_p8  ;;  %p1321_p10 = scmp.ne.s32.totalorder %s205_s22, %s1320_s28 }
  0x25   : > { %s1545_s3 = smov [#allocation6]  }
  0x26   : > { %p1323_p11 = pnand %p1321_p10, %p1309_p9  ;;  %s1325_s26 = sshll.u32 %s1545_s3, 4  ;;  %s1326_s26 = int_to_ptr.vmem [resolvable:$false] %s1325_s26 }
  0x27   : > { %s1327_s2 = scalar_lea.vmem %s1326_s26, 16384  ;;  %p1328_p13 = scmp.lt.s32.totalorder %s205_s22, %s1326_s26 }
  0x28   : > { %s203_s13 = scalar_lea.hbm %s1989_s1, %s979_s21  ;;  %p1324_p12 = pneg %p1323_p11 }
  0x29   : > { %p1329_p0 = scmp.lt.s32.totalorder %s1327_s2, %s1320_s28 }
  0x2b   : > { %p1330_p2 = por %p1329_p0, %p1328_p13 }
  0x2d   : > { %p1331_p3 = pnand %p1330_p2, %p1324_p12 }
  0x2f   : > { %1334 = shalt.err (!%p1331_p3)
}
  0x30   : > { %s1546_s12 = smov 256   ;;  %s1547_s21 = smov 128  }
  0x31   : > { %s1548_s30 = smov 8   ;;  %p983_p4 = scmp.ge.s32.totalorder %s1543_s25, 1 }
  0x32   : > { %1081 = dma.hbm_to_vmem [thread:$0]  (!%p1689_p8), %s203_s13, 8192, %s205_s22, %s1693_s7, %s1546_s12, %s1547_s21, %s1548_s30  }
  0x33   : > { %p231_p7 = scmp.lt.s32.totalorder %s1543_s25, 7  ;;  %s1707_s8 = sadd.s32 4294967295, %s1543_s25  }
  0x34   : > { %p48_p10 = scmp.eq.s32.totalorder %s1654_s29, 0  ;;  %s50_s9 = sadd.s32 1, %s1523_s20 }
  0x35   : > { %p1702_p9 = pnand %p983_p4, %p231_p7  ;;  %p57_p11 = scmp.ne.s32.totalorder %s1523_s20, %s1519_s19 }
  0x36   : > { %p63_p12 = scmp.ne.s32.totalorder %s1519_s19, %s1515_s18  ;;  %p64_p13 = scmp.eq.s32.totalorder %s1707_s8, 0 }
  0x37   : > { %s1716_s27 = scalar_select %p48_p10, %s1523_s20, %s50_s9  }
  0x38   : > { %p59_p8 = por %p58_p1, %p57_p11  ;;  %s169_s13 = sand.u32 1, %s1523_s20  }
  0x39   : > { %s1992_s0 = sld [smem:[#allocation20_spill]]  ;;  %p1729_p0 = por %p64_p13, %p63_p12 }
  0x3a   : > { %p1738_p2 = por %p91_p5, %p64_p13  ;;  %s972_s29 = sshll.u32 %s169_s13, 4 }
  0x3b   : > { %p1744_p3 = pnand %p1977_p6, %p59_p8  ;;  %s173_s2 = scalar_lea.vmem [#allocation3], %s972_s29 }
  0x3c   : > { %s170_s12 = scalar_lea.sflag [#allocation4], %s169_s13  ;;  %s1549_s15 = smov [#allocation3]  }
  0x3d   : > { %p1337_p4 = pneg %p1744_p3  ;;  %s1353_s30 = sshll.u32 %s1549_s15, 4  ;;  %s1354_s30 = int_to_ptr.vmem [resolvable:$false] %s1353_s30 }
  0x3e   : > { %s1355_s9 = scalar_lea.vmem %s1354_s30, 512 }
  0x3f   : > { %s181_s28 = scalar_lea.hbm %s1992_s0, %s1063_s4  ;;  %s183_s4 = sshll.u32 %s173_s2, 4  ;;  %s184_s4 = int_to_ptr.vmem [resolvable:$true] %s183_s4 }
  0x40   : > { %s1348_s21 = scalar_lea.vmem %s184_s4, 256  ;;  %p1356_p11 = scmp.lt.s32.totalorder %s184_s4, %s1354_s30 }
  0x41   : > { %p1349_p7 = scmp.ne.s32.totalorder %s184_s4, %s1348_s21  ;;  %p1357_p12 = scmp.lt.s32.totalorder %s1355_s9, %s1348_s21 }
  0x43   : > { %p1351_p10 = pnand %p1349_p7, %p1337_p4  ;;  %p1358_p8 = por %p1357_p12, %p1356_p11 }
  0x45   : > { %p1352_p5 = pneg %p1351_p10 }
  0x47   : > { %p1359_p6 = pnand %p1358_p8, %p1352_p5 }
  0x49   : > { %1362 = shalt.err (!%p1359_p6)
}
  0x4a   : > { %s1996_s13 = sld [smem:[#allocation15_spill]]  ;;  %s969_s10 = sadd.s32 4294967294, %s1543_s25  }
  0x4b   : > { %s1997_s22 = sld [smem:[#allocation14_spill]]  ;;  %p102_p4 = scmp.eq.s32.totalorder %s1671_s6, 0 }
  0x4c   : > { %1078 = dma.hbm_to_vmem [thread:$0]  (!%p1744_p3), %s181_s28, 256, %s184_s4, %s170_s12  }
  0x4d   : > { %s104_s29 = sadd.s32 1, %s1499_s14  ;;  %p143_p11 = scmp.eq.s32.totalorder %s1707_s8, 5 }
  0x4e   : > { %s1760_s26 = scalar_select %p102_p4, %s1499_s14, %s104_s29  }
  0x4f   : > { %p149_p12 = scmp.eq.s32.totalorder %s969_s10, 5  ;;  %s216_s21 = sand.u32 1, %s1499_s14  }
  0x50   : > { %p111_p6 = scmp.ne.s32.totalorder %s1499_s14, %s1996_s13  ;;  %s1065_s15 = sshll.u32 %s1539_s24, 5 }
  0x51   : > { %p117_p7 = scmp.ne.s32.totalorder %s1996_s13, %s1997_s22  ;;  %s980_s4 = sshll.u32 %s216_s21, 1 }
  0x52   : > { %p113_p10 = por %p111_p6, %p58_p1  ;;  %p1773_p3 = por %p143_p11, %p111_p6 }
  0x53   : > { %p1766_p5 = por %p117_p7, %p64_p13  ;;  %p1777_p8 = por %p149_p12, %p117_p7 }
  0x54   : > { %s2001_s9 = sld [smem:[#allocation22_spill]]  ;;  %p2002_p1 = scmp.lt.s32.totalorder %s1543_s25, 6 }
  0x55   : > { %s2000_s6 = scalar_select %p1777_p8, 1, 0 }
  0x56   : > { %p1786_p13 = pnand %p2002_p1, %p113_p10  ;;  %s218_s10 = scalar_lea.vmem [#allocation8], %s980_s4 }
  0x57   : > { %s226_s29 = sshll.u32 %s218_s10, 4  ;;  %s1550_s21 = smov [#allocation8]   ;;  %s227_s29 = int_to_ptr.vmem [resolvable:$true] %s226_s29 }
  0x58   : > { %p1365_p4 = pneg %p1786_p13  ;;  %s1376_s0 = scalar_lea.vmem %s227_s29, 32 }
  0x59   : > { %p1377_p6 = scmp.ne.s32.totalorder %s227_s29, %s1376_s0  ;;  %s1381_s1 = sshll.u32 %s1550_s21, 4  ;;  %s1382_s1 = int_to_ptr.vmem [resolvable:$false] %s1381_s1 }
  0x5a   : > { %s224_s13 = scalar_lea.hbm %s2001_s9, %s1065_s15  ;;  %s1383_s12 = scalar_lea.vmem %s1382_s1, 64 }
  0x5b   : > { %p1379_p7 = pnand %p1377_p6, %p1365_p4  ;;  %p1384_p12 = scmp.lt.s32.totalorder %s227_s29, %s1382_s1 }
  0x5c   : > { %p1385_p8 = scmp.lt.s32.totalorder %s1383_s12, %s1376_s0 }
  0x5d   : > { %p1380_p11 = pneg %p1379_p7 }
  0x5e   : > { %p1386_p10 = por %p1385_p8, %p1384_p12 }
  0x60   : > { %p1387_p1 = pnand %p1386_p10, %p1380_p11 }
  0x62   : > { %1390 = shalt.err (!%p1387_p1)
}
  0x63   : > { %1084 = dma.hbm_to_vmem [thread:$0]  (!%p1786_p13), %s224_s13, 32, %s227_s29, %s1693_s7  }
  0x64   : > { %235 = sbr.rel (%p1702_p9) target bundleno = 438 (0x1b6), region = 32  ;;  %s237_s15 = sand.u32 (!%p1702_p9), 1, %s1519_s19  }
  0x65   : > { %s1798_s4 = sshll.u32 (!%p1702_p9), %s237_s15, 4  ;;  %s238_s30 = scalar_lea.sflag (!%p1702_p9), [#allocation4], %s237_s15 }
  0x66   : > { %s241_s9 = scalar_lea.vmem (!%p1702_p9), [#allocation3], %s1798_s4 }
  0x69   : > { %1474 = dma.done.wait (%p1729_p0), %s238_s30, 256  }
  0x6a   : > { %1476 = vsyncadd (%p1729_p0), %s238_s30, 4294967040  ;;  %s246_s0 = sand.u32 1, %s1707_s8   ;;  %s248_s1 = sand.u32 1, %s1507_s16  }
  0x6b   : > { %s985_s7 = sshll.u32 %s248_s1, 9  ;;  %s247_s5 = scalar_lea.sflag [#allocation7], %s246_s0 }
  0x6c   : > { %s1807_s13 = scalar_lea.vmem [#allocation6], %s985_s7 }
  0x6d   : > { %1478 = dma.done.wait (%p1738_p2), %s247_s5, 8192  }
  0x6e   : > { %1480 = vsyncadd (%p1738_p2), %s247_s5, 4294959104  ;;  %s2004_s22 = sld [smem:[#allocation15_spill]] }
  0x74   : > { %s1814_s10 = sand.u32 1, %s2004_s22  }
  0x75   : > { %s986_s3 = sshll.u32 %s1814_s10, 1 }
  0x76   : > { %s1817_s29 = scalar_lea.vmem [#allocation8], %s986_s3 }
  0x77   : > { %1482 = dma.done.wait (%p1766_p5), %s247_s5, 32  }
  0x78   : > { %1484 = vsyncadd (%p1766_p5), %s247_s5, 4294967264  ;;  %s987_s8 = sshll.u32 %s1814_s10, 4  ;;  %s2005_s12 = sld [smem:[#allocation16_spill]] }
  0x79   : > { %s1824_s21 = scalar_lea.vmem [#allocation9], %s987_s8 }
  0x7e   : > { %p988_p9 = scmp.ne.s32.totalorder %s2005_s12, 0 }
  0x80   : > { %300 = sbr.rel (%p988_p9) target bundleno = 135 (0x87), region = 48 }
  0x85   : > { %v1551_v0 = vmov 0.0  }
  0x86   : > { %301 = vst [vmem:[#allocation2] sm:$0xff] %v1551_v0  ;;  %302 = vst [vmem:[#allocation2 + $0x8] sm:$0xff] %v1551_v0 }
  0x87 PF: > { %v1207_v1 = vld [vmem:[%s1807_s13 + $0x74] ss:$8 sps:$4 sm:$0xff]   ;;  %v1211_v3 = vld [vmem:[%s1807_s13 + $0x70] ss:$8 sps:$4 sm:$0xff]   ;;  %v1213_v5 = vld [vmem:[%s1807_s13 + $0x64] ss:$8 sps:$4 sm:$0xff]  }
  0x88   : > { %v1209_v2 = vld [vmem:[%s1807_s13 + $0x174] ss:$8 sps:$4 sm:$0xff]   ;;  %705 = vmatprep.subr.bf16.mxu0 %v1207_v1  ;;  %v1212_v4 = vld [vmem:[%s1807_s13 + $0x170] ss:$8 sps:$4 sm:$0xff]   ;;  %v1215_v6 = vld [vmem:[%s1807_s13 + $0x164] ss:$8 sps:$4 sm:$0xff]  }
  0x89   : > { %746 = vmatprep.subr.bf16.mxu1 %v1209_v2  ;;  %706 = vmatpush1.bf16.msra.mxu0 %v1211_v3  ;;  %v1217_v7 = vld [vmem:[%s1807_s13 + $0x60] ss:$8 sps:$4 sm:$0xff]   ;;  %v1219_v9 = vld [vmem:[%s1807_s13 + $0x54] ss:$8 sps:$4 sm:$0xff]   ;;  %v1223_v11 = vld [vmem:[%s1807_s13 + $0x50] ss:$8 sps:$4 sm:$0xff]  }
  0x8a   : > { %747 = vmatpush1.bf16.msra.mxu1 %v1212_v4  ;;  %707 = vmatprep.subr.bf16.mxu0 %v1213_v5  ;;  %v1218_v8 = vld [vmem:[%s1807_s13 + $0x160] ss:$8 sps:$4 sm:$0xff]   ;;  %v1221_v10 = vld [vmem:[%s1807_s13 + $0x154] ss:$8 sps:$4 sm:$0xff]   ;;  %v1224_v12 = vld [vmem:[%s1807_s13 + $0x150] ss:$8 sps:$4 sm:$0xff]  }
  0x8b   : > { %748 = vmatprep.subr.bf16.mxu1 %v1215_v6  ;;  %v1225_v13 = vld [vmem:[%s1807_s13 + $0x44] ss:$8 sps:$4 sm:$0xff]   ;;  %v1229_v15 = vld [vmem:[%s1807_s13 + $0x40] ss:$8 sps:$4 sm:$0xff]   ;;  %v1231_v17 = vld [vmem:[%s1807_s13 + $0x34] ss:$8 sps:$4 sm:$0xff]  }
  0x8c   : > { %v1227_v14 = vld [vmem:[%s1807_s13 + $0x144] ss:$8 sps:$4 sm:$0xff]   ;;  %v1230_v16 = vld [vmem:[%s1807_s13 + $0x140] ss:$8 sps:$4 sm:$0xff]   ;;  %v1233_v18 = vld [vmem:[%s1807_s13 + $0x134] ss:$8 sps:$4 sm:$0xff]  }
  0x8d   : > { %708 = vmatpush1.bf16.msra.mxu0 %v1217_v7  ;;  %v1235_v19 = vld [vmem:[%s1807_s13 + $0x30] ss:$8 sps:$4 sm:$0xff]   ;;  %v1237_v21 = vld [vmem:[%s1807_s13 + $0x24] ss:$8 sps:$4 sm:$0xff]   ;;  %v1241_v23 = vld [vmem:[%s1807_s13 + $0x20] ss:$8 sps:$4 sm:$0xff]  }
  0x8e   : > { %749 = vmatpush1.bf16.msra.mxu1 %v1218_v8  ;;  %709 = vmatprep.subr.bf16.mxu0 %v1219_v9  ;;  %v1236_v20 = vld [vmem:[%s1807_s13 + $0x130] ss:$8 sps:$4 sm:$0xff]   ;;  %v1239_v22 = vld [vmem:[%s1807_s13 + $0x124] ss:$8 sps:$4 sm:$0xff]   ;;  %v1242_v24 = vld [vmem:[%s1807_s13 + $0x120] ss:$8 sps:$4 sm:$0xff]  }
  0x8f   : > { %750 = vmatprep.subr.bf16.mxu1 %v1221_v10  ;;  %v1243_v25 = vld [vmem:[%s1807_s13 + $0x14] ss:$8 sps:$4 sm:$0xff]   ;;  %v1247_v27 = vld [vmem:[%s1807_s13 + $0x10] ss:$8 sps:$4 sm:$0xff]   ;;  %v1249_v29 = vld [vmem:[%s1807_s13 + $0x4] ss:$8 sps:$4 sm:$0xff]  }
  0x90   : > { %v1245_v26 = vld [vmem:[%s1807_s13 + $0x114] ss:$8 sps:$4 sm:$0xff]   ;;  %v1248_v28 = vld [vmem:[%s1807_s13 + $0x110] ss:$8 sps:$4 sm:$0xff]   ;;  %v1251_v30 = vld [vmem:[%s1807_s13 + $0x104] ss:$8 sps:$4 sm:$0xff]  }
  0x91   : > { %710 = vmatpush1.bf16.msra.mxu0 %v1223_v11  ;;  %v1253_v31 = vld [vmem:[%s1807_s13] ss:$8 sps:$4 sm:$0xff]   ;;  %v1255_v33 = vld [vmem:[%s1807_s13 + $0xf4] ss:$8 sps:$4 sm:$0xff]   ;;  %v1259_v35 = vld [vmem:[%s1807_s13 + $0xf0] ss:$8 sps:$4 sm:$0xff]  }
  0x92   : > { %751 = vmatpush1.bf16.msra.mxu1 %v1224_v12  ;;  %711 = vmatprep.subr.bf16.mxu0 %v1225_v13  ;;  %v1254_v32 = vld [vmem:[%s1807_s13 + $0x100] ss:$8 sps:$4 sm:$0xff]   ;;  %v1257_v34 = vld [vmem:[%s1807_s13 + $0x1f4] ss:$8 sps:$4 sm:$0xff]   ;;  %v1260_v36 = vld [vmem:[%s1807_s13 + $0x1f0] ss:$8 sps:$4 sm:$0xff]  }
  0x93   : > { %752 = vmatprep.subr.bf16.mxu1 %v1227_v14  ;;  %v1261_v37 = vld [vmem:[%s1807_s13 + $0xe4] ss:$8 sps:$4 sm:$0xff]   ;;  %v1265_v39 = vld [vmem:[%s1807_s13 + $0xe0] ss:$8 sps:$4 sm:$0xff]   ;;  %v1267_v41 = vld [vmem:[%s1807_s13 + $0xd4] ss:$8 sps:$4 sm:$0xff]  }
  0x94   : > { %v1263_v38 = vld [vmem:[%s1807_s13 + $0x1e4] ss:$8 sps:$4 sm:$0xff]   ;;  %v1266_v40 = vld [vmem:[%s1807_s13 + $0x1e0] ss:$8 sps:$4 sm:$0xff]   ;;  %v1269_v42 = vld [vmem:[%s1807_s13 + $0x1d4] ss:$8 sps:$4 sm:$0xff]  }
  0x95   : > { %712 = vmatpush1.bf16.msra.mxu0 %v1229_v15  ;;  %v1271_v43 = vld [vmem:[%s1807_s13 + $0xd0] ss:$8 sps:$4 sm:$0xff]   ;;  %v1273_v45 = vld [vmem:[%s1807_s13 + $0xc4] ss:$8 sps:$4 sm:$0xff]   ;;  %v1277_v50 = vld [vmem:[%s1807_s13 + $0xc0] ss:$8 sps:$4 sm:$0xff]  }
  0x96   : > { %753 = vmatpush1.bf16.msra.mxu1 %v1230_v16  ;;  %713 = vmatprep.subr.bf16.mxu0 %v1231_v17  ;;  %v1272_v44 = vld [vmem:[%s1807_s13 + $0x1d0] ss:$8 sps:$4 sm:$0xff]   ;;  %v1275_v46 = vld [vmem:[%s1807_s13 + $0x1c4] ss:$8 sps:$4 sm:$0xff]   ;;  %v1278_v51 = vld [vmem:[%s1807_s13 + $0x1c0] ss:$8 sps:$4 sm:$0xff]  }
  0x97   : > { %754 = vmatprep.subr.bf16.mxu1 %v1233_v18  ;;  %v305_v47 = vld [vmem:[%s241_s9] sm:$0xff]  ;;  %v306_v49 = vld [vmem:[%s241_s9 + $0x8] sm:$0xff]  ;;  %s2006_s18 = sld [smem:[#allocation16_spill]] }
  0x98   : > { %v990_v48 = vcombine.high %v305_v47, %v305_v47  ;;  %v992_v52 = vcombine.high %v306_v49, %v306_v49  ;;  %v1279_v53 = vld [vmem:[%s1807_s13 + $0xb4] ss:$8 sps:$4 sm:$0xff]   ;;  %v1283_v55 = vld [vmem:[%s1807_s13 + $0xb0] ss:$8 sps:$4 sm:$0xff]   ;;  %v1285_v57 = vld [vmem:[%s1807_s13 + $0xa4] ss:$8 sps:$4 sm:$0xff]   ;;  %v989_v5 = vcombine.low %v305_v47, %v305_v47  ;;  %v991_v6 = vcombine.low %v306_v49, %v306_v49 }
  0x99   : > { %714 = vmatpush1.bf16.msra.mxu0 %v1235_v19  ;;  %v1281_v54 = vld [vmem:[%s1807_s13 + $0x1b4] ss:$8 sps:$4 sm:$0xff]   ;;  %v1284_v56 = vld [vmem:[%s1807_s13 + $0x1b0] ss:$8 sps:$4 sm:$0xff]   ;;  %v1287_v58 = vld [vmem:[%s1807_s13 + $0x1a4] ss:$8 sps:$4 sm:$0xff]  }
  0x9a   : > { %755 = vmatpush1.bf16.msra.mxu1 %v1236_v20  ;;  %715 = vmatprep.subr.bf16.mxu0 %v1237_v21  ;;  %v1289_v59 = vld [vmem:[%s1807_s13 + $0xa0] ss:$8 sps:$4 sm:$0xff]   ;;  %v1291_v61 = vld [vmem:[%s1807_s13 + $0x94] ss:$8 sps:$4 sm:$0xff]   ;;  %v1295_v63 = vld [vmem:[%s1807_s13 + $0x90] ss:$8 sps:$4 sm:$0xff]  }
  0x9b   : > { %756 = vmatprep.subr.bf16.mxu1 %v1239_v22  ;;  %737 = vmatprep.mubr.bf16.mxu0 %v990_v48  ;;  %v1290_v60 = vld [vmem:[%s1807_s13 + $0x1a0] ss:$8 sps:$4 sm:$0xff]   ;;  %v1293_v62 = vld [vmem:[%s1807_s13 + $0x194] ss:$8 sps:$4 sm:$0xff]   ;;  %v1296_v0 = vld [vmem:[%s1807_s13 + $0x190] ss:$8 sps:$4 sm:$0xff]  }
  0x9c   : > { %778 = vmatprep.mubr.bf16.mxu1 %v992_v52  ;;  %v1297_v1 = vld [vmem:[%s1807_s13 + $0x84] ss:$8 sps:$4 sm:$0xff]   ;;  %v1301_v3 = vld [vmem:[%s1807_s13 + $0x80] ss:$8 sps:$4 sm:$0xff]   ;;  %v303_v8 = vld [vmem:[#allocation2] sm:$0xff] }
  0x9d   : > { %716 = vmatpush1.bf16.msra.mxu0 %v1241_v23  ;;  %v1299_v2 = vld [vmem:[%s1807_s13 + $0x184] ss:$8 sps:$4 sm:$0xff]   ;;  %v1302_v4 = vld [vmem:[%s1807_s13 + $0x180] ss:$8 sps:$4 sm:$0xff]   ;;  %v304_v12 = vld [vmem:[#allocation2 + $0x8] sm:$0xff]  ;;  %p1057_p0 = scmp.ne.s32.totalorder %s2006_s18, 2 }
  0x9e   : > { %757 = vmatpush1.bf16.msra.mxu1 %v1242_v24  ;;  %717 = vmatprep.subr.bf16.mxu0 %v1243_v25 }
  0x9f   : > { %758 = vmatprep.subr.bf16.mxu1 %v1245_v26 }
  0xa1   : > { %718 = vmatpush1.bf16.msra.mxu0 %v1247_v27 }
  0xa2   : > { %759 = vmatpush1.bf16.msra.mxu1 %v1248_v28  ;;  %719 = vmatprep.subr.bf16.mxu0 %v1249_v29 }
  0xa3   : > { %760 = vmatprep.subr.bf16.mxu1 %v1251_v30 }
  0xa5   : > { %720 = vmatpush1.bf16.msra.mxu0 %v1253_v31 }
  0xa6   : > { %761 = vmatpush1.bf16.msra.mxu1 %v1254_v32  ;;  %721 = vmatprep.subr.bf16.mxu0 %v1255_v33 }
  0xa7   : > { %762 = vmatprep.subr.bf16.mxu1 %v1257_v34 }
  0xa9   : > { %722 = vmatpush2.bf16.msra.mxu0 %v1259_v35 }
  0xaa   : > { %763 = vmatpush2.bf16.msra.mxu1 %v1260_v36  ;;  %723 = vmatprep.subr.bf16.mxu0 %v1261_v37 }
  0xab   : > { %764 = vmatprep.subr.bf16.mxu1 %v1263_v38 }
  0xad   : > { %724 = vmatpush2.bf16.msra.mxu0 %v1265_v39 }
  0xae   : > { %765 = vmatpush2.bf16.msra.mxu1 %v1266_v40  ;;  %725 = vmatprep.subr.bf16.mxu0 %v1267_v41 }
  0xaf   : > { %766 = vmatprep.subr.bf16.mxu1 %v1269_v42 }
  0xb1   : > { %726 = vmatpush2.bf16.msra.mxu0 %v1271_v43 }
  0xb2   : > { %767 = vmatpush2.bf16.msra.mxu1 %v1272_v44  ;;  %727 = vmatprep.subr.bf16.mxu0 %v1273_v45 }
  0xb3   : > { %768 = vmatprep.subr.bf16.mxu1 %v1275_v46 }
  0xb5   : > { %728 = vmatpush2.bf16.msra.mxu0 %v1277_v50 }
  0xb6   : > { %769 = vmatpush2.bf16.msra.mxu1 %v1278_v51  ;;  %729 = vmatprep.subr.bf16.mxu0 %v1279_v53 }
  0xb7   : > { %770 = vmatprep.subr.bf16.mxu1 %v1281_v54 }
  0xb9   : > { %730 = vmatpush2.bf16.msra.mxu0 %v1283_v55 }
  0xba   : > { %771 = vmatpush2.bf16.msra.mxu1 %v1284_v56  ;;  %731 = vmatprep.subr.bf16.mxu0 %v1285_v57 }
  0xbb   : > { %772 = vmatprep.subr.bf16.mxu1 %v1287_v58 }
  0xbd   : > { %732 = vmatpush2.bf16.msra.mxu0 %v1289_v59 }
  0xbe   : > { %773 = vmatpush2.bf16.msra.mxu1 %v1290_v60  ;;  %733 = vmatprep.subr.bf16.mxu0 %v1291_v61 }
  0xbf   : > { %774 = vmatprep.subr.bf16.mxu1 %v1293_v62 }
  0xc1   : > { %734 = vmatpush2.bf16.msra.mxu0 %v1295_v63 }
  0xc2   : > { %775 = vmatpush2.bf16.msra.mxu1 %v1296_v0  ;;  %735 = vmatprep.subr.bf16.mxu0 %v1297_v1 }
  0xc3   : > { %776 = vmatprep.subr.bf16.mxu1 %v1299_v2 }
  0xc5   : > { %736 = vmatpush2.bf16.msra.mxu0 %v1301_v3 }
  0xc6   : > { %777 = vmatpush2.bf16.msra.mxu1 %v1302_v4 }
  0xc8   : > { %738 = vmatmul.mubr.bf16.vlgmr.msra.gmra.mxu0 %v989_v5 }
  0xc9   : > { %779 = vmatmul.mubr.bf16.vlgmr.msra.gmra.mxu1 %v991_v6 }
 0x188   : > { %v739_v7 = vpop.f32.mrf.mxu0 }
 0x189   : > { %v780_v9 = vpop.f32.mrf.mxu1 }
 0x18a   : > { %v781_v10 = vadd.f32 %v780_v9, %v739_v7  ;;  %v741_v11 = vpop.f32.mrf.mxu0 }
 0x18b   : > { %v782_v13 = vpop.f32.mrf.mxu1 }
 0x18c   : > { %v787_v14 = vadd.f32 %v781_v10, %v303_v8  ;;  %v783_v15 = vadd.f32 %v782_v13, %v741_v11  ;;  %v743_v16 = vpop.f32.mrf.mxu0  ;;  %794 = sbr.rel (%p1057_p0) target bundleno = 414 (0x19e), region = 52 }
 0x18d   : > { %v784_v17 = vpop.f32.mrf.mxu1 }
 0x18e   : > { %789 = vst [vmem:[#allocation2] sm:$0xff] %v787_v14  ;;  %v788_v18 = vadd.f32 %v783_v15, %v304_v12  ;;  %v744_v19 = vpop.f32.mrf.mxu0 }
 0x18f   : > { %v785_v20 = vpop.f32.mrf.mxu1 }
 0x190   : > { %790 = vst [vmem:[#allocation2 + $0x8] sm:$0xff] %v788_v18 }
 0x191   : > { %v799_v21 = vlaneseq  ;;  %v797_v23 = vld [vmem:[%s1817_s29] sm:$0x3] }
 0x193   : > { %v800_v22 = vshrl.u32 %v799_v21, 7 }
 0x195   : > { %v801_v24 = vsub.s32 0, %v800_v22  ;;  %v805_v25 = vsub.s32 1, %v800_v22  ;;  %v795_v26 = vld [vmem:[#allocation2] sm:$0xff] }
 0x197   : > { %v796_v27 = vld [vmem:[#allocation2 + $0x8] sm:$0xff]  ;;  %v802_v28 = vrot.slane %v797_v23, %v801_v24  ;;  %v806_v29 = vrot.slane %v797_v23, %v805_v25 }
 0x199   : > { %v809_v30 = vadd.f32 %v802_v28, %v795_v26  ;;  %v810_v31 = vadd.f32 %v806_v29, %v796_v27 }
 0x19b   : > { %v811_v32 = vmax.f32 %v809_v30, 0.0  ;;  %v812_v33 = vmax.f32 %v810_v31, 0.0 }
 0x19d   : > { %813 = vst [vmem:[%s1824_s21] sm:$0xff] %v811_v32  ;;  %814 = vst [vmem:[%s1824_s21 + $0x8] sm:$0xff] %v812_v33 }
 0x19e PF: > { %s2007_s2 = sld [smem:[#allocation17_spill]]  ;;  %s832_s1 = sshll.u32 %s1824_s21, 4  ;;  %s833_s1 = int_to_ptr.vmem [resolvable:$true] %s832_s1 }
 0x19f   : > { %s2008_s9 = sld [smem:[#allocation23_spill]]  ;;  %s816_s7 = scalar_lea.sflag [#allocation5], %s1814_s10 }
 0x1a0   : > { %s1391_s5 = scalar_lea.vmem %s833_s1, 256  ;;  %s1552_s13 = smov [#allocation9]  }
 0x1a1   : > { %p1392_p2 = scmp.ne.s32.totalorder %s833_s1, %s1391_s5  ;;  %s1395_s22 = sshll.u32 %s1552_s13, 4  ;;  %s1396_s22 = int_to_ptr.vmem [resolvable:$false] %s1395_s22 }
 0x1a2   : > { %s1397_s3 = scalar_lea.vmem %s1396_s22, 512  ;;  %p1398_p13 = scmp.lt.s32.totalorder %s833_s1, %s1396_s22 }
 0x1a3   : > { %p1393_p5 = pnand %p1392_p2, %p1773_p3  ;;  %p1399_p4 = scmp.lt.s32.totalorder %s1397_s3, %s1391_s5 }
 0x1a4   : > { %s1066_s15 = sshll.u32 %s2007_s2, 8 }
 0x1a5   : > { %s830_s0 = scalar_lea.hbm %s2008_s9, %s1066_s15  ;;  %p1394_p8 = pneg %p1393_p5 }
 0x1a6   : > { %p1400_p6 = por %p1399_p4, %p1398_p13 }
 0x1a8   : > { %p1401_p7 = pnand %p1400_p6, %p1394_p8 }
 0x1aa   : > { %1404 = shalt.err (!%p1401_p7)
}
 0x1ab   : > { %s1405_s29 = scalar_lea.hbm %s830_s0, 256  ;;  %s1409_s21 = scalar_lea.hbm %s2008_s9, 512 }
 0x1ac   : > { %p1406_p11 = scmp.ne.s32.totalorder %s830_s0, %s1405_s29  ;;  %p1410_p1 = scmp.lt.s32.totalorder %s830_s0, %s2008_s9 }
 0x1ad   : > { %p1411_p9 = scmp.lt.s32.totalorder %s1409_s21, %s1405_s29 }
 0x1ae   : > { %p1407_p12 = pnand %p1406_p11, %p1773_p3 }
 0x1af   : > { %p1412_p0 = por %p1411_p9, %p1410_p1 }
 0x1b0   : > { %p1408_p10 = pneg %p1407_p12 }
 0x1b2   : > { %p1413_p2 = pnand %p1412_p0, %p1408_p10 }
 0x1b4   : > { %1416 = shalt.err (!%p1413_p2)
}
 0x1b5   : > { %1073 = dma.vmem_to_hbm [thread:$0]  (%p1773_p3), %s833_s1, 256, %s830_s0, %s816_s7  }
 0x1b6 PF: > { %s2009_s2 = sld [smem:[#allocation14_spill]]  ;;  %p1090_p5 = scmp.ge.s32.totalorder %s1543_s25, 2 }
 0x1b7   : > { %p2010_p8 = scmp.ne.s32.totalorder %s2000_s6, 0 }
 0x1b9   : > { %p1086_p13 = pnand %p1090_p5, %p2010_p8 }
 0x1bb   : > { %p1087_p4 = pneg %p1086_p13 }
 0x1bc   : > { %s844_s15 = sand.u32 1, %s2009_s2  }
 0x1bd   : > { %s845_s4 = scalar_lea.sflag [#allocation5], %s844_s15 }
 0x1be   : > { %1486 = dma.done.wait (%p1087_p4), %s845_s4, 256  }
 0x1bf   : > { %1488 = vsyncadd (%p1087_p4), %s845_s4, 4294967040  ;;  %s22_s25 = sadd.s32 1, %s1543_s25   ;;  %s2012_s12 = sld [smem:[#allocation15_spill]] }
 0x1c0   : > { %p1922_p6 = scmp.ge.s32.totalorder %s22_s25, 8   ;;  %s2013_s28 = sld [smem:[#allocation18_spill]] }
 0x1c1   : > { %s2014_s6 = sld [smem:[#allocation19_spill]]  ;;  %s2015_s13 = smov %s1499_s14 }
 0x1c2   : > { %s2016_s14 = smov %s1760_s26  ;;  %s2017_s15 = smov %s1507_s16 }
 0x1c3   : > { %s2018_s16 = smov %s1511_s17  ;;  %s2019_s17 = smov %s1678_s11 }
 0x1c4   : > { %s2020_s18 = smov %s1519_s19  ;;  %s2021_s19 = smov %s1523_s20 }
 0x1c5   : > { %s2022_s20 = smov %s1716_s27  ;;  %s2023_s21 = smov %s1535_s23 }
 0x1c6   : > { %s2024_s22 = smov %s1539_s24  ;;  %s2025_s23 = smov %s2013_s28 }
 0x1c7   : > { %s2026_s24 = smov %s2014_s6  ;;  %21 = sbr.rel (!%p1922_p6) target bundleno = 17 (0x11), region = 109 }
 0x1cc   :  { %850 = vsyncpa [#allocation4], 1 }
 0x1cd   :  { %852 = vsyncpa [#allocation4 + $0x1], 1 }
 0x1ce   :  { %853 = vsyncpa [#allocation7], 1 }
 0x1cf   :  { %855 = vsyncpa [#allocation7 + $0x1], 1 }
 0x1d0   :  { %856 = vsyncpa [#allocation5], 1 }
 0x1d1   :  { %858 = vsyncpa [#allocation5 + $0x1], 1 }

</bundles_post_ra>
